<compile_context>
chip_gen: v5e
topology: v5e:2x2
jax: 0.10.0
libtpu: 0.0.40
codegen_flags: <defaults>
</compile_context>

<pallas_src>
import math

import jax
import jax.numpy as jnp
from jax.experimental import pallas as pl
from jax.experimental.pallas import tpu as pltpu

LANE = 128      # vreg lane width
SUBLANE_BF16 = 16  # bf16 sublane packing (2x 8-row f32 sublanes)


def _round_up(n, m):
    return ((n + m - 1) // m) * m


def _leaky_relu(x, slope=0.2):
    # max(h, slope*h) == LeakyReLU for 0 < slope < 1 (one vmul + one vmax).
    return jnp.maximum(x, slope * x)


def mlp_g_toy_kernel(x_ref, w0_ref, b0_ref, w1_ref, b1_ref, w2_ref, b2_ref, o_ref):
    """Fused 3-layer MLP on one (tb, nz) batch tile.

    x arrives in f32 straight from HBM and is cast to the MXU dtype in-kernel.
    Matmuls accumulate in f32; the bias + LeakyReLU epilogues stay in f32 and
    activations are cast back to the MXU dtype only right before the next dot.
    """
    mxu_dtype = w0_ref.dtype
    x = x_ref[...].astype(mxu_dtype)                                   # (tb, nz)

    # fc0 + LeakyReLU(0.2)   (K = nz, unpadded; MXU pads K internally)
    h = jnp.dot(x, w0_ref[...], preferred_element_type=jnp.float32) + b0_ref[...]
    h = _leaky_relu(h)

    # fc1 + LeakyReLU(0.2)
    h = jnp.dot(h.astype(mxu_dtype), w1_ref[...],
                preferred_element_type=jnp.float32) + b1_ref[...]
    h = _leaky_relu(h)

    # fc (output layer), outactivation='none'; lane-dense (n_pad) result.
    y = jnp.dot(h.astype(mxu_dtype), w2_ref[...],
                preferred_element_type=jnp.float32) + b2_ref[...]
    o_ref[...] = y.astype(o_ref.dtype)


def _choose_tile_b(B, tile_b):
    """Pick the batch tile: big, bf16-sublane aligned, and >=2 steps when possible."""
    tile_b = max(SUBLANE_BF16, _round_up(tile_b, SUBLANE_BF16))
    tb = min(tile_b, _round_up(B, SUBLANE_BF16))
    # v7x has two TensorCores: give the "parallel" batch axis at least two
    # roughly balanced steps whenever there is enough work to split.
    if B > 2 * SUBLANE_BF16 and pl.cdiv(_round_up(B, SUBLANE_BF16), tb) < 2:
        tb = _round_up(pl.cdiv(B, 2), SUBLANE_BF16)
    return tb


def mlp_g_toy_forward(x, params, *, tile_b=2048, mxu_dtype=jnp.bfloat16,
                      out_dtype=jnp.float32, return_padded=False):
    """x: (B, nz) float32; params: W0,b0,W1,b1,W2,b2 with W as (in, out), b as (1, out).

    Returns (B, nx) in `out_dtype` (or the padded lane-dense (b_pad, n_pad) buffer
    when return_padded=True, letting the consumer slice / fuse it).
    """
    B, nz = x.shape
    width = params["W0"].shape[1]
    nx = params["W2"].shape[1]
    n_pad = _round_up(nx, LANE)          # lane-dense output (unmasked stores)

    tb = _choose_tile_b(B, tile_b)
    b_pad = _round_up(B, tb)
    grid = (b_pad // tb,)

    # Cheap batch-only pad (f32, nz lanes) -- no lane padding, no host bf16 cast.
    if b_pad != B:
        x = jnp.pad(x, ((0, b_pad - B), (0, 0)))

    f32 = jnp.float32
    # Tiny resident weights: cast to the MXU dtype once; only W2/b2 are
    # zero-padded along the output-feature axis to keep the store lane-dense.
    w0 = params["W0"].astype(mxu_dtype)                      # (nz, width)
    b0 = params["b0"].astype(f32)                            # (1, width)
    w1 = params["W1"].astype(mxu_dtype)                      # (width, width)
    b1 = params["b1"].astype(f32)                            # (1, width)
    w2 = jnp.zeros((width, n_pad), mxu_dtype).at[:, :nx].set(params["W2"].astype(mxu_dtype))
    b2 = jnp.zeros((1, n_pad), f32).at[:, :nx].set(params["b2"].astype(f32))

    def resident(shape):
        # Full-array block, constant index -> loaded once, stays in VMEM.
        return pl.BlockSpec(shape, lambda i: (0, 0))

    # Rough per-step VMEM footprint; only raise the scoped-VMEM limit when it
    # could exceed v5e's 16 MiB default (huge tiles).  At tb=2048 it is ~6 MiB.
    out_isz = jnp.dtype(out_dtype).itemsize
    mxu_isz = jnp.dtype(mxu_dtype).itemsize
    weight_bytes = ((w0.size + w1.size + w2.size) * mxu_isz
                    + (b0.size + b1.size + b2.size) * 4)
    vmem_est = (2 * tb * nz * 4              # double-buffered x tiles (f32)
                + 2 * tb * n_pad * out_isz   # double-buffered out tiles
                + 4 * tb * width * 4         # f32 intermediates + cast headroom
                + 2 * weight_bytes)          # resident weights (double-buffered)
    cp_kwargs = dict(dimension_semantics=("parallel",))
    if vmem_est > 12 * 1024 * 1024:
        cp_kwargs["vmem_limit_bytes"] = int(min(2 * vmem_est, 48 * 1024 * 1024))

    out = pl.pallas_call(
        mlp_g_toy_kernel,
        out_shape=jax.ShapeDtypeStruct((b_pad, n_pad), out_dtype),
        grid=grid,
        in_specs=[
            pl.BlockSpec((tb, nz), lambda i: (i, 0)),   # x tile, streamed (f32, unpadded lanes)
            resident(w0.shape), resident(b0.shape),
            resident(w1.shape), resident(b1.shape),
            resident(w2.shape), resident(b2.shape),
        ],
        out_specs=pl.BlockSpec((tb, n_pad), lambda i: (i, 0)),
        compiler_params=pltpu.CompilerParams(**cp_kwargs),
    )(x, w0, b0, w1, b1, w2, b2)

    if return_padded:
        return out                      # (b_pad, n_pad), lane-dense; caller slices/fuses
    # Module's forward: output.view(B, nx) -- slice away lane/batch padding.
    return out[:B, :nx]


def init_params(key, nz, nx, width, depth):
    """torch.nn.Linear-style init (U[-1/sqrt(fan_in), 1/sqrt(fan_in)]).

    Weights stored as (in_features, out_features) (transpose of torch), biases (1, out).
    """
    widths = [nz] + [width] * (depth - 1) + [nx]
    params = {}
    keys = jax.random.split(key, 2 * depth)
    for i in range(depth):
        fan_in, fan_out = widths[i], widths[i + 1]
        bound = 1.0 / math.sqrt(fan_in)
        params[f"W{i}"] = jax.random.uniform(
            keys[2 * i], (fan_in, fan_out), minval=-bound, maxval=bound, dtype=jnp.float32)
        params[f"b{i}"] = jax.random.uniform(
            keys[2 * i + 1], (1, fan_out), minval=-bound, maxval=bound, dtype=jnp.float32)
    return params


def reference_forward(x, params, mxu_dtype=jnp.float32):
    """Pure-JAX reference (optionally with the same bf16-input MXU path)."""
    def dot(a, w):
        return jnp.dot(a.astype(mxu_dtype), w.astype(mxu_dtype),
                       preferred_element_type=jnp.float32)
    h = dot(x, params["W0"]) + params["b0"]
    h = jnp.where(h > 0, h, 0.2 * h)
    h = dot(h, params["W1"]) + params["b1"]
    h = jnp.where(h > 0, h, 0.2 * h)
    return dot(h, params["W2"]) + params["b2"]


if __name__ == "__main__":
    # Small shapes consistent with the module: latent nz -> data nx.
    B, nz, nx, width, depth = 200, 16, 32, 128, 3

    key = jax.random.PRNGKey(0)
    k_x, k_p = jax.random.split(key)
    x = jax.random.normal(k_x, (B, nz), dtype=jnp.float32)
    params = init_params(k_p, nz, nx, width, depth)

    # Small tile: exercises a multi-step grid with a ragged (padded) last tile.
    y = mlp_g_toy_forward(x, params, tile_b=64)
    y = jax.block_until_ready(y)
    assert y.shape == (B, nx)

    # Default tile path (auto-split into >=2 balanced steps for v7x).
    y_default = jax.block_until_ready(mlp_g_toy_forward(x, params))
    assert y_default.shape == (B, nx)
    assert jnp.allclose(y, y_default, atol=1e-5, rtol=1e-5), "tile-size mismatch"

    # Compare against a reference that uses the same bf16 MXU inputs (f32 accum).
    y_ref = reference_forward(x, params, mxu_dtype=jnp.bfloat16)
    assert jnp.allclose(y, y_ref, atol=1e-2, rtol=1e-2), "mismatch vs reference"

    # Sanity vs the pure-f32 reference (loose tolerance for bf16 MXU inputs).
    y_ref_f32 = reference_forward(x, params, mxu_dtype=jnp.float32)
    assert jnp.allclose(y, y_ref_f32, atol=8e-2, rtol=8e-2), "mismatch vs f32 reference"

    print("KERNEL_OK")
</pallas_src>

<mosaic_0001>
module attributes {stable_mosaic.version = 11 : i64} {
  func.func @mlp_g_toy_kernel(%arg0: i32, %arg1: memref<64x16xf32, #tpu.memory_space<vmem>>, %arg2: memref<16x128xbf16, #tpu.memory_space<vmem>>, %arg3: memref<1x128xf32, #tpu.memory_space<vmem>>, %arg4: memref<128x128xbf16, #tpu.memory_space<vmem>>, %arg5: memref<1x128xf32, #tpu.memory_space<vmem>>, %arg6: memref<128x128xbf16, #tpu.memory_space<vmem>>, %arg7: memref<1x128xf32, #tpu.memory_space<vmem>>, %arg8: memref<64x128xf32, #tpu.memory_space<vmem>>) attributes {dimension_semantics = [#tpu.dimension_semantics<parallel>], iteration_bounds = array<i64: 4>, scalar_prefetch = 0 : i64, scratch_operands = 0 : i64, tpu.core_type = #tpu.core_type<tc>, window_params = [{transform_indices = @transform_0, window_bounds = array<i64: 64, 16>}, {pipeline_mode = #tpu.pipeline_mode<synchronous>, transform_indices = @transform_1, window_bounds = array<i64: 16, 128>}, {pipeline_mode = #tpu.pipeline_mode<synchronous>, transform_indices = @transform_2, window_bounds = array<i64: 1, 128>}, {pipeline_mode = #tpu.pipeline_mode<synchronous>, transform_indices = @transform_3, window_bounds = array<i64: 128, 128>}, {pipeline_mode = #tpu.pipeline_mode<synchronous>, transform_indices = @transform_4, window_bounds = array<i64: 1, 128>}, {pipeline_mode = #tpu.pipeline_mode<synchronous>, transform_indices = @transform_5, window_bounds = array<i64: 128, 128>}, {pipeline_mode = #tpu.pipeline_mode<synchronous>, transform_indices = @transform_6, window_bounds = array<i64: 1, 128>}, {transform_indices = @transform_7, window_bounds = array<i64: 64, 128>}]} {
    %c0 = arith.constant 0 : index
    %c0_0 = arith.constant 0 : index
    %0 = vector.load %arg1[%c0, %c0_0] : memref<64x16xf32, #tpu.memory_space<vmem>>, vector<64x16xf32>
    %1 = arith.truncf %0 : vector<64x16xf32> to vector<64x16xbf16>
    %c0_1 = arith.constant 0 : index
    %c0_2 = arith.constant 0 : index
    %2 = vector.load %arg2[%c0_1, %c0_2] : memref<16x128xbf16, #tpu.memory_space<vmem>>, vector<16x128xbf16>
    %cst = arith.constant dense<0.000000e+00> : vector<64x128xf32>
    %3 = tpu.matmul %1, %2, %cst {dimension_numbers = #tpu.dot_dimension_numbers<[1], [0], [0], [1], [0, 0, 1, 1], [], []>} : vector<64x16xbf16>, vector<16x128xbf16>, vector<64x128xf32> -> vector<64x128xf32>
    %c0_3 = arith.constant 0 : index
    %c0_4 = arith.constant 0 : index
    %4 = vector.load %arg3[%c0_3, %c0_4] : memref<1x128xf32, #tpu.memory_space<vmem>>, vector<1x128xf32>
    %5 = vector.broadcast %4 : vector<1x128xf32> to vector<64x128xf32>
    %6 = arith.addf %3, %5 : vector<64x128xf32>
    %cst_5 = arith.constant 2.000000e-01 : f32
    %7 = vector.broadcast %cst_5 : f32 to vector<64x128xf32>
    %8 = arith.mulf %7, %6 : vector<64x128xf32>
    %9 = arith.maximumf %6, %8 : vector<64x128xf32>
    %10 = arith.truncf %9 : vector<64x128xf32> to vector<64x128xbf16>
    %c0_6 = arith.constant 0 : index
    %c0_7 = arith.constant 0 : index
    %11 = vector.load %arg4[%c0_6, %c0_7] : memref<128x128xbf16, #tpu.memory_space<vmem>>, vector<128x128xbf16>
    %cst_8 = arith.constant dense<0.000000e+00> : vector<64x128xf32>
    %12 = tpu.matmul %10, %11, %cst_8 {dimension_numbers = #tpu.dot_dimension_numbers<[1], [0], [0], [1], [0, 0, 1, 1], [], []>} : vector<64x128xbf16>, vector<128x128xbf16>, vector<64x128xf32> -> vector<64x128xf32>
    %c0_9 = arith.constant 0 : index
    %c0_10 = arith.constant 0 : index
    %13 = vector.load %arg5[%c0_9, %c0_10] : memref<1x128xf32, #tpu.memory_space<vmem>>, vector<1x128xf32>
    %14 = vector.broadcast %13 : vector<1x128xf32> to vector<64x128xf32>
    %15 = arith.addf %12, %14 : vector<64x128xf32>
    %cst_11 = arith.constant 2.000000e-01 : f32
    %16 = vector.broadcast %cst_11 : f32 to vector<64x128xf32>
    %17 = arith.mulf %16, %15 : vector<64x128xf32>
    %18 = arith.maximumf %15, %17 : vector<64x128xf32>
    %19 = arith.truncf %18 : vector<64x128xf32> to vector<64x128xbf16>
    %c0_12 = arith.constant 0 : index
    %c0_13 = arith.constant 0 : index
    %20 = vector.load %arg6[%c0_12, %c0_13] : memref<128x128xbf16, #tpu.memory_space<vmem>>, vector<128x128xbf16>
    %cst_14 = arith.constant dense<0.000000e+00> : vector<64x128xf32>
    %21 = tpu.matmul %19, %20, %cst_14 {dimension_numbers = #tpu.dot_dimension_numbers<[1], [0], [0], [1], [0, 0, 1, 1], [], []>} : vector<64x128xbf16>, vector<128x128xbf16>, vector<64x128xf32> -> vector<64x128xf32>
    %c0_15 = arith.constant 0 : index
    %c0_16 = arith.constant 0 : index
    %22 = vector.load %arg7[%c0_15, %c0_16] : memref<1x128xf32, #tpu.memory_space<vmem>>, vector<1x128xf32>
    %23 = vector.broadcast %22 : vector<1x128xf32> to vector<64x128xf32>
    %24 = arith.addf %21, %23 : vector<64x128xf32>
    %c0_17 = arith.constant 0 : index
    %c0_18 = arith.constant 0 : index
    %25 = vector.load %arg8[%c0_17, %c0_18] : memref<64x128xf32, #tpu.memory_space<vmem>>, vector<64x128xf32>
    tpu.vector_store %arg8[%c0_17, %c0_18], %24 {strides = array<i32>} : memref<64x128xf32, #tpu.memory_space<vmem>>, vector<64x128xf32>,
    return
  }
  func.func @transform_0(%arg0: i32) -> (i32, i32) {
    %c0_i32 = arith.constant 0 : i32
    %c0_i32_0 = arith.constant 0 : i32
    return %arg0, %c0_i32 : i32, i32
  }
  func.func @transform_1(%arg0: i32) -> (i32, i32) {
    %c0_i32 = arith.constant 0 : i32
    %c0_i32_0 = arith.constant 0 : i32
    %c0_i32_1 = arith.constant 0 : i32
    return %c0_i32, %c0_i32_0 : i32, i32
  }
  func.func @transform_2(%arg0: i32) -> (i32, i32) {
    %c0_i32 = arith.constant 0 : i32
    %c0_i32_0 = arith.constant 0 : i32
    %c0_i32_1 = arith.constant 0 : i32
    return %c0_i32, %c0_i32_0 : i32, i32
  }
  func.func @transform_3(%arg0: i32) -> (i32, i32) {
    %c0_i32 = arith.constant 0 : i32
    %c0_i32_0 = arith.constant 0 : i32
    %c0_i32_1 = arith.constant 0 : i32
    return %c0_i32, %c0_i32_0 : i32, i32
  }
  func.func @transform_4(%arg0: i32) -> (i32, i32) {
    %c0_i32 = arith.constant 0 : i32
    %c0_i32_0 = arith.constant 0 : i32
    %c0_i32_1 = arith.constant 0 : i32
    return %c0_i32, %c0_i32_0 : i32, i32
  }
  func.func @transform_5(%arg0: i32) -> (i32, i32) {
    %c0_i32 = arith.constant 0 : i32
    %c0_i32_0 = arith.constant 0 : i32
    %c0_i32_1 = arith.constant 0 : i32
    return %c0_i32, %c0_i32_0 : i32, i32
  }
  func.func @transform_6(%arg0: i32) -> (i32, i32) {
    %c0_i32 = arith.constant 0 : i32
    %c0_i32_0 = arith.constant 0 : i32
    %c0_i32_1 = arith.constant 0 : i32
    return %c0_i32, %c0_i32_0 : i32, i32
  }
  func.func @transform_7(%arg0: i32) -> (i32, i32) {
    %c0_i32 = arith.constant 0 : i32
    %c0_i32_0 = arith.constant 0 : i32
    return %arg0, %c0_i32 : i32, i32
  }
}

</mosaic_0001>

<bundles_post_ra>
// kernel: tpu_custom_call.1
= control target key start
LH: loop header
LB: loop body
LE: loop exit
PB: predicated region body
PF: predicated region fallthrough
CT: control target
= control target key end

     0   :  { %12 = vsyncpa [#allocation3], 0  ;;  %s1087_s0 = inlined_call_operand.vmem [shape: f32[256,16], index: 0, kind: input, shape index: {}]   ;;  %s1088_s1 = inlined_call_operand.vmem [shape: bf16[16,128], index: 1, kind: input, shape index: {}]   ;;  %s1089_s2 = inlined_call_operand.vmem [shape: f32[1,128], index: 2, kind: input, shape index: {}]   ;;  %s1090_s3 = inlined_call_operand.vmem [shape: bf16[128,128], index: 3, kind: input, shape index: {}]   ;;  %s1091_s4 = inlined_call_operand.vmem [shape: f32[1,128], index: 4, kind: input, shape index: {}]   ;;  %s1092_s5 = inlined_call_operand.vmem [shape: bf16[128,128], index: 5, kind: input, shape index: {}]   ;;  %s1093_s6 = inlined_call_operand.vmem [shape: f32[1,128], index: 6, kind: input, shape index: {}]   ;;  %s1094_s7 = inlined_call_operand.hbm [shape: f32[256,128], index: 7, kind: output, shape index: {}]  }
   0x1   :  { %14 = vsyncpa [#allocation3 + $0x1], 0  ;;  %s935_s24 = smov 0   ;;  %s937_s25 = smov 0  }
   0x2   :  { %s939_s26 = smov 0   ;;  %s941_s27 = smov 0  }
   0x3 LB: > { %s956_s28 = sadd.s32 4294967295, %s891_s27   ;;  %s667_s29 = sadd.s32 4294967294, %s891_s27   ;;  %s891_s27 = sphi %s941_s27, %s1100_s27   ;;  %s887_s26 = sphi %s939_s26, %s1099_s26   ;;  %s883_s25 = sphi %s937_s25, %s1098_s25   ;;  %s879_s24 = sphi %s935_s24, %s1097_s24  }
   0x4   : > { %s960_s30 = sadd.s32 1, %s891_s27   ;;  %s179_s8 = sadd.s32 1, %s887_s26 }
   0x5   : > { %s176_s9 = ssub.s32 %s891_s27, %s960_s30  ;;  %p189_p0 = scmp.ne.s32.totalorder %s887_s26, %s883_s25 }
   0x6   : > { %p177_p1 = scmp.eq.s32.totalorder %s176_s9, 0  ;;  %p190_p2 = scmp.eq.s32.totalorder %s956_s28, 3 }
   0x7   : > { %p195_p3 = scmp.ne.s32.totalorder %s883_s25, %s879_s24  ;;  %p196_p4 = scmp.eq.s32.totalorder %s667_s29, 3 }
   0x8   : > { %s971_s10 = scalar_select %p177_p1, %s887_s26, %s179_s8  }
   0x9   : > { %p973_p5 = por %p190_p2, %p189_p0  ;;  %p977_p6 = por %p196_p4, %p195_p3 }
   0xa   : > { %p670_p7 = scmp.ge.s32.totalorder %s891_s27, 1  ;;  %p241_p8 = scmp.lt.s32.totalorder %s891_s27, 5 }
   0xc   : > { %p242_p9 = pnand %p670_p7, %p241_p8 }
   0xd   : > { %s672_s15 = sshll.u32 (!%p242_p9), %s956_s28, 3  ;;  %s270_s14 = sand.u32 (!%p242_p9), 1, %s883_s25  }
   0xe   : > { %245 = sbr.rel (%p242_p9) target bundleno = 509 (0x1fd), region = 48  ;;  %p274_p10 = scmp.lt.s32.totalorder (!%p242_p9), %s672_s15, 31 }
   0xf   : > { %s768_s20 = sshll.u32 (!%p242_p9), %s956_s28, 6  ;;  %s590_s8 = scalar_lea.sflag (!%p242_p9), [#allocation3], %s270_s14 }
  0x10   : > { %s601_s22 = scalar_lea.hbm (!%p242_p9), %s1094_s7, %s768_s20 }
  0x11   : > { %s604_s29 = sshll.u32 (!%p242_p9), %s601_s22, 4  ;;  %s605_s29 = int_to_ptr.hbm [resolvable:$true] %s604_s29 }
  0x12   : > { %s843_s9 = sshra.s32 (!%p242_p9), %s605_s29, 4  ;;  %s844_s9 = int_to_ptr.hbm [resolvable:$true] %s843_s9 }
  0x13   : > { %v751_v0 = vld [vmem:[%s1088_s1] sm:$0xff]  ;;  %s1102_s15 = smov (!%p274_p10, %s672_s15), 31  ;;  %vm305_vm0 = vcmask 130048   ;;  %v759_v7 = vld [vmem:[%s1090_s3 + $0x38] sm:$0xff]  ;;  %v758_v8 = vld [vmem:[%s1090_s3 + $0x30] sm:$0xff]  ;;  %s845_s28 = scalar_lea.hbm %s844_s9, 64 }
  0x14   : > { %325 = vmatpush.bf16.msra.mxu0 %v751_v0  ;;  %s673_s16 = sshll.u32 %s1102_s15, 3  ;;  %435 = vmatpush.bf16.msra.mxu1 %v759_v7  ;;  %v757_v9 = vld [vmem:[%s1090_s3 + $0x28] sm:$0xff]  ;;  %v756_v12 = vld [vmem:[%s1090_s3 + $0x20] sm:$0xff]  ;;  %v755_v17 = vld [vmem:[%s1090_s3 + $0x18] sm:$0xff]  ;;  %s671_s15 = sshll.u32 %s270_s14, 6 }
  0x15   : > { %s277_s19 = scalar_lea.vmem %s1087_s0, %s673_s16  ;;  %769 = vmatpush.bf16.msra.mxu3 %v759_v7  ;;  %v754_v18 = vld [vmem:[%s1090_s3 + $0x10] sm:$0xff]  ;;  %v753_v19 = vld [vmem:[%s1090_s3 + $0x8] sm:$0xff]  ;;  %v752_v20 = vld [vmem:[%s1090_s3] sm:$0xff]  ;;  %s272_s18 = scalar_lea.vmem [#allocation2], %s671_s15 }
  0x16   : > { %v281_v1 = vld [vmem:[%s277_s19] sm:$0xff]  ;;  %v282_v2 = vld [vmem:[%s277_s19 + $0x8] sm:$0xff]  ;;  %v283_v4 = vld [vmem:[%s277_s19 + $0x10] sm:$0xff]  ;;  %s602_s23 = sshll.u32 %s272_s18, 4  ;;  %p846_p11 = scmp.ne.s32.totalorder %s844_s9, %s845_s28  ;;  %s603_s23 = int_to_ptr.vmem [resolvable:$true] %s602_s23 }
  0x17   : > { %v289_v3 = vpack.c.bf16 %v282_v2, %v281_v1  ;;  %v284_v5 = vld [vmem:[%s277_s19 + $0x18] sm:$0xff]  ;;  %v285_v10 = vld [vmem:[%s277_s19 + $0x20] sm:$0xff]  ;;  %v286_v11 = vld [vmem:[%s277_s19 + $0x28] sm:$0xff]  ;;  %s849_s16 = scalar_lea.hbm %s1094_s7, 256  ;;  %p850_p0 = scmp.lt.s32.totalorder %s844_s9, %s1094_s7 }
  0x18   : > { %v290_v6 = vpack.c.bf16 %v284_v5, %v283_v4  ;;  %436 = vmatpush.bf16.msra.mxu1 %v758_v8  ;;  %v291_v13 = vpack.c.bf16 %v286_v11, %v285_v10  ;;  %v287_v14 = vld [vmem:[%s277_s19 + $0x30] sm:$0xff]  ;;  %v288_v15 = vld [vmem:[%s277_s19 + $0x38] sm:$0xff]  ;;  %v826_v22 = vld [vmem:[%s1089_s2] ss:$0 sm:$0xff]  ;;  %p847_p12 = pnand %p846_p11, %p973_p5  ;;  %p851_p1 = scmp.lt.s32.totalorder %s849_s16, %s845_s28 }
  0x19   : > { %678 = vmatmul.msk.bf16.vlgmr.msra.gmra.mxu0 %vm305_vm0, %v289_v3  ;;  %770 = vmatpush.bf16.msra.mxu3 %v758_v8  ;;  %v292_v16 = vpack.c.bf16 %v288_v15, %v287_v14  ;;  %v767_v41 = vld [vmem:[%s1092_s5 + $0x38] sm:$0xff]  ;;  %v766_v42 = vld [vmem:[%s1092_s5 + $0x30] sm:$0xff]  ;;  %v765_v44 = vld [vmem:[%s1092_s5 + $0x28] sm:$0xff] }
  0x1a   : > { %777 = vmatpush.bf16.msra.mxu2 %v767_v41  ;;  %v764_v49 = vld [vmem:[%s1092_s5 + $0x20] sm:$0xff]  ;;  %v763_v62 = vld [vmem:[%s1092_s5 + $0x18] sm:$0xff]  ;;  %v762_v63 = vld [vmem:[%s1092_s5 + $0x10] sm:$0xff]  ;;  %p848_p13 = pneg %p847_p12  ;;  %p852_p2 = por %p851_p1, %p850_p0 }
  0x1b   : > { %v761_v0 = vld [vmem:[%s1092_s5 + $0x8] sm:$0xff]  ;;  %v760_v1 = vld [vmem:[%s1092_s5] sm:$0xff] }
  0x1c   : > { %437 = vmatpush.bf16.msra.mxu1 %v757_v9  ;;  %v827_v3 = vld [vmem:[%s1091_s4] ss:$0 sm:$0xff]  ;;  %p853_p3 = pnand %p852_p2, %p848_p13 }
  0x1d   : > { %771 = vmatpush.bf16.msra.mxu3 %v757_v9 }
  0x1e   : > { %778 = vmatpush.bf16.msra.mxu2 %v766_v42 }
  0x20   : > { %438 = vmatpush.bf16.msra.mxu1 %v756_v12 }
  0x21   : > { %772 = vmatpush.bf16.msra.mxu3 %v756_v12 }
  0x22   : > { %779 = vmatpush.bf16.msra.mxu2 %v765_v44 }
  0x24   : > { %439 = vmatpush.bf16.msra.mxu1 %v755_v17 }
  0x25   : > { %773 = vmatpush.bf16.msra.mxu3 %v755_v17 }
  0x26   : > { %780 = vmatpush.bf16.msra.mxu2 %v764_v49 }
  0x28   : > { %440 = vmatpush.bf16.msra.mxu1 %v754_v18 }
  0x29   : > { %679 = vmatmul.msk.bf16.gmra.mxu0 %vm305_vm0, %v290_v6  ;;  %774 = vmatpush.bf16.msra.mxu3 %v754_v18 }
  0x2a   : > { %781 = vmatpush.bf16.msra.mxu2 %v763_v62 }
  0x2c   : > { %441 = vmatpush.bf16.msra.mxu1 %v753_v19 }
  0x2d   : > { %775 = vmatpush.bf16.msra.mxu3 %v753_v19 }
  0x2e   : > { %782 = vmatpush.bf16.msra.mxu2 %v762_v63 }
  0x30   : > { %442 = vmatpush.bf16.msra.mxu1 %v752_v20 }
  0x31   : > { %776 = vmatpush.bf16.msra.mxu3 %v752_v20 }
  0x32   : > { %783 = vmatpush.bf16.msra.mxu2 %v761_v0 }
  0x34   : > { %552 = vmatpush.bf16.msrb.mxu1 %v767_v41 }
  0x36   : > { %784 = vmatpush.bf16.msra.mxu2 %v760_v1 }
  0x38   : > { %553 = vmatpush.bf16.msrb.mxu1 %v766_v42 }
  0x39   : > { %680 = vmatmul.msk.bf16.gmra.mxu0 %vm305_vm0, %v291_v13 }
  0x3c   : > { %554 = vmatpush.bf16.msrb.mxu1 %v765_v44 }
  0x40   : > { %555 = vmatpush.bf16.msrb.mxu1 %v764_v49 }
  0x44   : > { %556 = vmatpush.bf16.msrb.mxu1 %v763_v62 }
  0x48   : > { %557 = vmatpush.bf16.msrb.mxu1 %v762_v63 }
  0x49   : > { %681 = vmatmul.msk.bf16.gmra.mxu0 %vm305_vm0, %v292_v16 }
  0x4c   : > { %558 = vmatpush.bf16.msrb.mxu1 %v761_v0 }
  0x50   : > { %559 = vmatpush.bf16.msrb.mxu1 %v760_v1 }
  0x96   : > { %v327_v21 = vpop.f32.mrf.mxu0 }
  0x97   : > { %v328_v23 = vadd.f32 %v826_v22, %v327_v21 }
  0x99   : > { %v347_v25 = vmul.f32 0.2, %v328_v23 }
  0x9b   : > { %v355_v28 = vmax.f32 %v328_v23, %v347_v25 }
  0x9e   : > { %v329_v24 = vpop.f32.mrf.mxu0 }
  0x9f   : > { %v330_v26 = vadd.f32 %v826_v22, %v329_v24 }
  0xa1   : > { %v348_v27 = vmul.f32 0.2, %v330_v26 }
  0xa3   : > { %v356_v29 = vmax.f32 %v330_v26, %v348_v27 }
  0xa5   : > { %v363_v30 = vpack.c.bf16 %v356_v29, %v355_v28 }
  0xa6   : > { %v332_v31 = vpop.f32.mrf.mxu0 }
  0xa7   : > { %443 = vmatmul.bf16.vlgmr.msra.gmra.mxu1 %v363_v30  ;;  %v333_v32 = vadd.f32 %v826_v22, %v332_v31 }
  0xa9   : > { %v349_v34 = vmul.f32 0.2, %v333_v32 }
  0xab   : > { %v357_v37 = vmax.f32 %v333_v32, %v349_v34 }
  0xae   : > { %v334_v33 = vpop.f32.mrf.mxu0 }
  0xaf   : > { %v335_v35 = vadd.f32 %v826_v22, %v334_v33 }
  0xb1   : > { %v350_v36 = vmul.f32 0.2, %v335_v35 }
  0xb3   : > { %v358_v38 = vmax.f32 %v335_v35, %v350_v36 }
  0xb5   : > { %v364_v39 = vpack.c.bf16 %v358_v38, %v357_v37 }
  0xb6   : > { %v337_v40 = vpop.f32.mrf.mxu0 }
  0xb7   : > { %448 = vmatmul.bf16.vlgmr.msra.gmra.mxu3 %v364_v39  ;;  %v338_v43 = vadd.f32 %v826_v22, %v337_v40  ;;  %v828_v39 = vld [vmem:[%s1093_s6] ss:$0 sm:$0xff] }
  0xb9   : > { %v351_v46 = vmul.f32 0.2, %v338_v43 }
  0xbb   : > { %v359_v50 = vmax.f32 %v338_v43, %v351_v46 }
  0xbe   : > { %v339_v45 = vpop.f32.mrf.mxu0 }
  0xbf   : > { %v340_v47 = vadd.f32 %v826_v22, %v339_v45 }
  0xc1   : > { %v352_v48 = vmul.f32 0.2, %v340_v47 }
  0xc3   : > { %v360_v51 = vmax.f32 %v340_v47, %v352_v48 }
  0xc5   : > { %v365_v52 = vpack.c.bf16 %v360_v51, %v359_v50 }
  0xc6   : > { %v342_v53 = vpop.f32.mrf.mxu0 }
  0xc7   : > { %453 = vmatmul.bf16.gmra.mxu3 %v365_v52  ;;  %v343_v54 = vadd.f32 %v826_v22, %v342_v53 }
  0xc9   : > { %v353_v56 = vmul.f32 0.2, %v343_v54 }
  0xcb   : > { %v361_v59 = vmax.f32 %v343_v54, %v353_v56 }
  0xce   : > { %v344_v55 = vpop.f32.mrf.mxu0 }
  0xcf   : > { %v345_v57 = vadd.f32 %v826_v22, %v344_v55 }
  0xd1   : > { %v354_v58 = vmul.f32 0.2, %v345_v57 }
  0xd3   : > { %v362_v60 = vmax.f32 %v345_v57, %v354_v58 }
  0xd5   : > { %v366_v61 = vpack.c.bf16 %v362_v60, %v361_v59 }
  0xd7   : > { %458 = vmatmul.bf16.gmra.mxu3 %v366_v61 }
 0x124   : > { %v444_v2 = vpop.f32.mrf.mxu1 }
 0x125   : > { %v445_v4 = vadd.f32 %v827_v3, %v444_v2 }
 0x127   : > { %v464_v6 = vmul.f32 0.2, %v445_v4 }
 0x129   : > { %v472_v9 = vmax.f32 %v445_v4, %v464_v6 }
 0x12c   : > { %v446_v5 = vpop.f32.mrf.mxu1 }
 0x12d   : > { %v447_v7 = vadd.f32 %v827_v3, %v446_v5 }
 0x12f   : > { %v465_v8 = vmul.f32 0.2, %v447_v7 }
 0x131   : > { %v473_v10 = vmax.f32 %v447_v7, %v465_v8 }
 0x133   : > { %v480_v11 = vpack.c.bf16 %v473_v10, %v472_v9 }
 0x135   : > { %560 = vmatmul.bf16.vlgmr.msrb.gmra.mxu1 %v480_v11 }
 0x13a   : > { %v449_v12 = vpop.f32.mrf.mxu3 }
 0x13b   : > { %v450_v13 = vadd.f32 %v827_v3, %v449_v12 }
 0x13d   : > { %v466_v15 = vmul.f32 0.2, %v450_v13 }
 0x13f   : > { %v474_v18 = vmax.f32 %v450_v13, %v466_v15 }
 0x142   : > { %v451_v14 = vpop.f32.mrf.mxu3 }
 0x143   : > { %v452_v16 = vadd.f32 %v827_v3, %v451_v14 }
 0x145   : > { %v467_v17 = vmul.f32 0.2, %v452_v16 }
 0x147   : > { %v475_v19 = vmax.f32 %v452_v16, %v467_v17 }
 0x149   : > { %v481_v20 = vpack.c.bf16 %v475_v19, %v474_v18 }
 0x14a   : > { %v454_v21 = vpop.f32.mrf.mxu3 }
 0x14b   : > { %565 = vmatmul.bf16.vlgmr.msra.gmra.mxu2 %v481_v20  ;;  %v455_v22 = vadd.f32 %v827_v3, %v454_v21 }
 0x14d   : > { %v468_v24 = vmul.f32 0.2, %v455_v22 }
 0x14f   : > { %v476_v27 = vmax.f32 %v455_v22, %v468_v24 }
 0x152   : > { %v456_v23 = vpop.f32.mrf.mxu3 }
 0x153   : > { %v457_v25 = vadd.f32 %v827_v3, %v456_v23 }
 0x155   : > { %v469_v26 = vmul.f32 0.2, %v457_v25 }
 0x157   : > { %v477_v28 = vmax.f32 %v457_v25, %v469_v26 }
 0x159   : > { %v482_v29 = vpack.c.bf16 %v477_v28, %v476_v27 }
 0x15a   : > { %v459_v30 = vpop.f32.mrf.mxu3 }
 0x15b   : > { %570 = vmatmul.bf16.gmra.mxu2 %v482_v29  ;;  %v460_v31 = vadd.f32 %v827_v3, %v459_v30 }
 0x15d   : > { %v470_v33 = vmul.f32 0.2, %v460_v31 }
 0x15f   : > { %v478_v36 = vmax.f32 %v460_v31, %v470_v33 }
 0x162   : > { %v461_v32 = vpop.f32.mrf.mxu3 }
 0x163   : > { %v462_v34 = vadd.f32 %v827_v3, %v461_v32 }
 0x165   : > { %v471_v35 = vmul.f32 0.2, %v462_v34 }
 0x167   : > { %v479_v37 = vmax.f32 %v462_v34, %v471_v35 }
 0x169   : > { %v483_v38 = vpack.c.bf16 %v479_v37, %v478_v36 }
 0x16b   : > { %575 = vmatmul.bf16.gmra.mxu2 %v483_v38 }
 0x1b2   : > { %v561_v40 = vpop.f32.mrf.mxu1 }
 0x1b3   : > { %v562_v41 = vadd.f32 %v828_v39, %v561_v40 }
 0x1b5   : > { %581 = vst [vmem:[%s272_s18] sm:$0xff] %v562_v41 }
 0x1ba   : > { %v563_v42 = vpop.f32.mrf.mxu1 }
 0x1bb   : > { %v564_v43 = vadd.f32 %v828_v39, %v563_v42 }
 0x1bd   : > { %582 = vst [vmem:[%s272_s18 + $0x8] sm:$0xff] %v564_v43 }
 0x1ce   : > { %v566_v44 = vpop.f32.mrf.mxu2 }
 0x1cf   : > { %v567_v45 = vadd.f32 %v828_v39, %v566_v44 }
 0x1d1   : > { %583 = vst [vmem:[%s272_s18 + $0x10] sm:$0xff] %v567_v45 }
 0x1d6   : > { %v568_v46 = vpop.f32.mrf.mxu2 }
 0x1d7   : > { %v569_v47 = vadd.f32 %v828_v39, %v568_v46 }
 0x1d9   : > { %584 = vst [vmem:[%s272_s18 + $0x18] sm:$0xff] %v569_v47 }
 0x1de   : > { %v571_v48 = vpop.f32.mrf.mxu2 }
 0x1df   : > { %v572_v49 = vadd.f32 %v828_v39, %v571_v48 }
 0x1e1   : > { %585 = vst [vmem:[%s272_s18 + $0x20] sm:$0xff] %v572_v49 }
 0x1e6   : > { %v573_v50 = vpop.f32.mrf.mxu2 }
 0x1e7   : > { %v574_v51 = vadd.f32 %v828_v39, %v573_v50 }
 0x1e9   : > { %586 = vst [vmem:[%s272_s18 + $0x28] sm:$0xff] %v574_v51 }
 0x1ee   : > { %v576_v52 = vpop.f32.mrf.mxu2 }
 0x1ef   : > { %v577_v53 = vadd.f32 %v828_v39, %v576_v52 }
 0x1f1   : > { %587 = vst [vmem:[%s272_s18 + $0x30] sm:$0xff] %v577_v53 }
 0x1f6   : > { %v578_v54 = vpop.f32.mrf.mxu2 }
 0x1f7   : > { %v579_v55 = vadd.f32 %v828_v39, %v578_v54 }
 0x1f9   : > { %588 = vst [vmem:[%s272_s18 + $0x38] sm:$0xff] %v579_v55 }
 0x1fa   : > { %856 = shalt.err (!%p853_p3)
}
 0x1fb   : > { %s893_s14 = smov 128   ;;  %s894_s18 = smov 8  }
 0x1fc   : > { %785 = dma.vmem_to_hbm [thread:$0]  (%p973_p5), %s603_s23, 1024, %s605_s29, %s590_s8, %s893_s14, %s893_s14, %s894_s18  }
 0x1fd PF: > { %p791_p4 = scmp.ge.s32.totalorder %s891_s27, 2  ;;  %s619_s19 = sand.u32 1, %s879_s24  }
 0x1fe   : > { %s620_s21 = scalar_lea.sflag [#allocation3], %s619_s19 }
 0x1ff   : > { %p788_p7 = pnand %p791_p4, %p977_p6 }
 0x201   : > { %p789_p8 = pneg %p788_p7 }
 0x203   : > { %874 = dma.done.wait (%p789_p8), %s620_s21, 1024  }
 0x204   : > { %876 = vsyncadd (%p789_p8), %s620_s21, 4294966272  ;;  %p17_p9 = scmp.ge.s32.totalorder %s960_s30, 6   ;;  %s1097_s24 = smov %s883_s25 }
 0x205   : > { %s1098_s25 = smov %s887_s26  ;;  %s1099_s26 = smov %s971_s10 }
 0x206   : > { %s1100_s27 = smov %s960_s30  ;;  %19 = sbr.rel (!%p17_p9) target bundleno = 3 (0x3), region = 83 }
 0x20b   :  { %626 = vsyncpa [#allocation3], 1 }
 0x20c   :  { %628 = vsyncpa [#allocation3 + $0x1], 1 }

</bundles_post_ra>
